<compile_context>
chip_gen: v6e
topology: v6e:2x2x1
jax: 0.10.0
libtpu: 0.0.40
codegen_flags: <defaults>
</compile_context>

<pallas_src>
import jax
import jax.numpy as jnp
from jax.experimental import pallas as pl
from jax.experimental.pallas import tpu as pltpu


def controller_kernel(diff_ref, cur_ref, red_ref,
                      w1_ref, b1_ref, w2_ref, b2_ref,
                      w3_ref, b3_ref, w4_ref, b4_ref,
                      wo_ref, bo_ref, out_ref):
    # diff_ref: (BT*N, D)  cur_ref: (BT, D)  red_ref: (BT, BT*N)  out_ref: (BT, Dh)
    x = diff_ref[...]

    # linear1 + relu, linear2 + relu  -- one big (BT*N, D) matmul each
    h = jnp.dot(x, w1_ref[...], preferred_element_type=jnp.float32) + b1_ref[...]
    h = jnp.maximum(h, 0.0)                                           # (BT*N, H)
    h = jnp.dot(h, w2_ref[...], preferred_element_type=jnp.float32) + b2_ref[...]
    h = jnp.maximum(h, 0.0)                                           # (BT*N, H)

    # adjacency scale + per-batch node sum fused into a single MXU contraction:
    # red is block-diagonal with adj weights, so (red @ h)[b] = sum_n adj[n]*h[b,n]
    hs = jnp.dot(red_ref[...], h, preferred_element_type=jnp.float32)  # (BT, H)

    # linear3 + relu, linear4 + relu
    h = jnp.dot(hs, w3_ref[...], preferred_element_type=jnp.float32) + b3_ref[...]
    h = jnp.maximum(h, 0.0)                                           # (BT, H)
    h = jnp.dot(h, w4_ref[...], preferred_element_type=jnp.float32) + b4_ref[...]
    h = jnp.maximum(h, 0.0)                                           # (BT, H)

    # output(cat([cur_x, h], -1)) -- single dot against the whole (D+H, Dh) weight
    xc = jnp.concatenate([cur_ref[...], h], axis=-1)                  # (BT, D+H)
    out = jnp.dot(xc, wo_ref[...], preferred_element_type=jnp.float32) + bo_ref[...]
    out_ref[...] = out.astype(out_ref.dtype)                          # (BT, Dh)


def controller_forward(params, cur_x, diff_x, adj_col, except_control_node_list,
                       *, batch_tile=256):
    B, N, D = diff_x.shape
    H = params["w1"].shape[1]
    Dh = params["wo"].shape[1]                       # dim // 2

    # Glue: tiny gather of the adjacency column (wrapper-side, one XLA gather).
    adj_g = adj_col[except_control_node_list].astype(jnp.float32)      # (N,)

    # Batch tile: whole batch in one step when small; tiled for large B so the
    # "parallel" grid axis can be sharded across TensorCores (v7x megacore).
    BT = B if B <= batch_tile else batch_tile
    Bp = ((B + BT - 1) // BT) * BT
    if Bp != B:
        pad = Bp - B
        diff_x = jnp.pad(diff_x, ((0, pad), (0, 0), (0, 0)))
        cur_x = jnp.pad(cur_x, ((0, pad), (0, 0)))

    # Block-diagonal reduction matrix: identical for every batch tile.
    red = jnp.kron(jnp.eye(BT, dtype=jnp.float32), adj_g[None, :])     # (BT, BT*N)
    diff2 = diff_x.reshape(Bp * N, D)                                  # (Bp*N, D)

    out = pl.pallas_call(
        controller_kernel,
        out_shape=jax.ShapeDtypeStruct((Bp, Dh), jnp.float32),
        grid_spec=pltpu.PrefetchScalarGridSpec(
            num_scalar_prefetch=0,
            grid=(Bp // BT,),
            in_specs=[
                pl.BlockSpec((BT * N, D),  lambda i: (i, 0)),   # diff rows of tile
                pl.BlockSpec((BT, D),      lambda i: (i, 0)),   # cur rows of tile
                pl.BlockSpec((BT, BT * N), lambda i: (0, 0)),   # reduction matrix
                pl.BlockSpec((D, H),       lambda i: (0, 0)),   # w1
                pl.BlockSpec((1, H),       lambda i: (0, 0)),   # b1
                pl.BlockSpec((H, H),       lambda i: (0, 0)),   # w2
                pl.BlockSpec((1, H),       lambda i: (0, 0)),   # b2
                pl.BlockSpec((H, H),       lambda i: (0, 0)),   # w3
                pl.BlockSpec((1, H),       lambda i: (0, 0)),   # b3
                pl.BlockSpec((H, H),       lambda i: (0, 0)),   # w4
                pl.BlockSpec((1, H),       lambda i: (0, 0)),   # b4
                pl.BlockSpec((D + H, Dh),  lambda i: (0, 0)),   # wo (whole, unsplit)
                pl.BlockSpec((1, Dh),      lambda i: (0, 0)),   # bo
            ],
            out_specs=pl.BlockSpec((BT, Dh), lambda i: (i, 0)),
        ),
        compiler_params=pltpu.CompilerParams(
            dimension_semantics=("parallel",)),
    )(diff2, cur_x, red,
      params["w1"], params["b1"], params["w2"], params["b2"],
      params["w3"], params["b3"], params["w4"], params["b4"],
      params["wo"], params["bo"])
    return out[:B]


def init_params(key, dim, hid):
    """Deterministic nn.Linear-style init; weights stored as (in, out)."""
    def linear(k, fan_in, fan_out):
        k1, k2 = jax.random.split(k)
        bound = 1.0 / float(fan_in) ** 0.5
        w = jax.random.uniform(k1, (fan_in, fan_out), jnp.float32, -bound, bound)
        b = jax.random.uniform(k2, (1, fan_out), jnp.float32, -bound, bound)
        return w, b
    ks = jax.random.split(key, 5)
    w1, b1 = linear(ks[0], dim, hid)
    w2, b2 = linear(ks[1], hid, hid)
    w3, b3 = linear(ks[2], hid, hid)
    w4, b4 = linear(ks[3], hid, hid)
    wo, bo = linear(ks[4], dim + hid, dim // 2)   # rows [0:dim]->cur_x, [dim:]->hidden
    return dict(w1=w1, b1=b1, w2=w2, b2=b2, w3=w3, b3=b3, w4=w4, b4=b4, wo=wo, bo=bo)


def reference_forward(params, cur_x, diff_x, adj_col, except_list):
    """Pure-JAX mirror of the PyTorch forward, for correctness checking."""
    x = jax.nn.relu(diff_x @ params["w1"] + params["b1"])
    x = jax.nn.relu(x @ params["w2"] + params["b2"])
    a = adj_col[except_list]                              # (N,)
    x = x * a[None, :, None]                              # == unsqueeze(1).expand
    xs = x.sum(axis=1)                                    # torch.sum(x, 1)
    x = jax.nn.relu(xs @ params["w3"] + params["b3"])
    x = jax.nn.relu(x @ params["w4"] + params["b4"])
    xc = jnp.concatenate([cur_x, x], axis=-1)
    return xc @ params["wo"] + params["bo"]


if __name__ == "__main__":
    dim, hid = 32, 32
    B = 4              # batch
    num_nodes = 12     # total nodes in adj_col
    N = 8              # uncontrolled nodes (len(except_control_node_list))

    key = jax.random.PRNGKey(0)
    kp, k1, k2, k3 = jax.random.split(key, 4)
    params = init_params(kp, dim, hid)

    cur_x = jax.random.normal(k1, (B, dim), jnp.float32)
    diff_x = jax.random.normal(k2, (B, N, dim), jnp.float32)
    adj_col = jax.random.uniform(k3, (num_nodes,), jnp.float32)
    except_control_node_list = jnp.array([0, 1, 2, 4, 5, 7, 9, 11], dtype=jnp.int32)

    out = controller_forward(params, cur_x, diff_x, adj_col, except_control_node_list)
    out = jax.block_until_ready(out)

    ref = reference_forward(params, cur_x, diff_x, adj_col, except_control_node_list)
    assert out.shape == (B, dim // 2), out.shape
    assert jnp.allclose(out, ref, atol=1e-4, rtol=1e-4), float(jnp.max(jnp.abs(out - ref)))
    print("KERNEL_OK")
</pallas_src>

<mosaic_0001>
module attributes {stable_mosaic.version = 11 : i64} {
  func.func @controller_kernel(%arg0: i32, %arg1: memref<32x32xf32, #tpu.memory_space<vmem>>, %arg2: memref<4x32xf32, #tpu.memory_space<vmem>>, %arg3: memref<4x32xf32, #tpu.memory_space<vmem>>, %arg4: memref<32x32xf32, #tpu.memory_space<vmem>>, %arg5: memref<1x32xf32, #tpu.memory_space<vmem>>, %arg6: memref<32x32xf32, #tpu.memory_space<vmem>>, %arg7: memref<1x32xf32, #tpu.memory_space<vmem>>, %arg8: memref<32x32xf32, #tpu.memory_space<vmem>>, %arg9: memref<1x32xf32, #tpu.memory_space<vmem>>, %arg10: memref<32x32xf32, #tpu.memory_space<vmem>>, %arg11: memref<1x32xf32, #tpu.memory_space<vmem>>, %arg12: memref<64x16xf32, #tpu.memory_space<vmem>>, %arg13: memref<1x16xf32, #tpu.memory_space<vmem>>, %arg14: memref<4x16xf32, #tpu.memory_space<vmem>>) attributes {dimension_semantics = [#tpu.dimension_semantics<parallel>], iteration_bounds = array<i64: 1>, scalar_prefetch = 0 : i64, scratch_operands = 0 : i64, tpu.core_type = #tpu.core_type<tc>, window_params = [{transform_indices = @transform_0, window_bounds = array<i64: 32, 32>}, {transform_indices = @transform_1, window_bounds = array<i64: 4, 32>}, {pipeline_mode = #tpu.pipeline_mode<synchronous>, transform_indices = @transform_2, window_bounds = array<i64: 4, 32>}, {pipeline_mode = #tpu.pipeline_mode<synchronous>, transform_indices = @transform_3, window_bounds = array<i64: 32, 32>}, {pipeline_mode = #tpu.pipeline_mode<synchronous>, transform_indices = @transform_4, window_bounds = array<i64: 1, 32>}, {pipeline_mode = #tpu.pipeline_mode<synchronous>, transform_indices = @transform_5, window_bounds = array<i64: 32, 32>}, {pipeline_mode = #tpu.pipeline_mode<synchronous>, transform_indices = @transform_6, window_bounds = array<i64: 1, 32>}, {pipeline_mode = #tpu.pipeline_mode<synchronous>, transform_indices = @transform_7, window_bounds = array<i64: 32, 32>}, {pipeline_mode = #tpu.pipeline_mode<synchronous>, transform_indices = @transform_8, window_bounds = array<i64: 1, 32>}, {pipeline_mode = #tpu.pipeline_mode<synchronous>, transform_indices = @transform_9, window_bounds = array<i64: 32, 32>}, {pipeline_mode = #tpu.pipeline_mode<synchronous>, transform_indices = @transform_10, window_bounds = array<i64: 1, 32>}, {pipeline_mode = #tpu.pipeline_mode<synchronous>, transform_indices = @transform_11, window_bounds = array<i64: 64, 16>}, {pipeline_mode = #tpu.pipeline_mode<synchronous>, transform_indices = @transform_12, window_bounds = array<i64: 1, 16>}, {transform_indices = @transform_13, window_bounds = array<i64: 4, 16>}]} {
    %c0 = arith.constant 0 : index
    %c0_0 = arith.constant 0 : index
    %0 = vector.load %arg1[%c0, %c0_0] : memref<32x32xf32, #tpu.memory_space<vmem>>, vector<32x32xf32>
    %c0_1 = arith.constant 0 : index
    %c0_2 = arith.constant 0 : index
    %1 = vector.load %arg4[%c0_1, %c0_2] : memref<32x32xf32, #tpu.memory_space<vmem>>, vector<32x32xf32>
    %cst = arith.constant dense<0.000000e+00> : vector<32x32xf32>
    %2 = tpu.matmul %0, %1, %cst {dimension_numbers = #tpu.dot_dimension_numbers<[1], [0], [0], [1], [0, 0, 1, 1], [], []>} : vector<32x32xf32>, vector<32x32xf32>, vector<32x32xf32> -> vector<32x32xf32>
    %c0_3 = arith.constant 0 : index
    %c0_4 = arith.constant 0 : index
    %3 = vector.load %arg5[%c0_3, %c0_4] : memref<1x32xf32, #tpu.memory_space<vmem>>, vector<1x32xf32>
    %4 = vector.broadcast %3 : vector<1x32xf32> to vector<32x32xf32>
    %5 = arith.addf %2, %4 : vector<32x32xf32>
    %cst_5 = arith.constant 0.000000e+00 : f32
    %6 = vector.broadcast %cst_5 : f32 to vector<32x32xf32>
    %7 = arith.maximumf %5, %6 : vector<32x32xf32>
    %c0_6 = arith.constant 0 : index
    %c0_7 = arith.constant 0 : index
    %8 = vector.load %arg6[%c0_6, %c0_7] : memref<32x32xf32, #tpu.memory_space<vmem>>, vector<32x32xf32>
    %cst_8 = arith.constant dense<0.000000e+00> : vector<32x32xf32>
    %9 = tpu.matmul %7, %8, %cst_8 {dimension_numbers = #tpu.dot_dimension_numbers<[1], [0], [0], [1], [0, 0, 1, 1], [], []>} : vector<32x32xf32>, vector<32x32xf32>, vector<32x32xf32> -> vector<32x32xf32>
    %c0_9 = arith.constant 0 : index
    %c0_10 = arith.constant 0 : index
    %10 = vector.load %arg7[%c0_9, %c0_10] : memref<1x32xf32, #tpu.memory_space<vmem>>, vector<1x32xf32>
    %11 = vector.broadcast %10 : vector<1x32xf32> to vector<32x32xf32>
    %12 = arith.addf %9, %11 : vector<32x32xf32>
    %cst_11 = arith.constant 0.000000e+00 : f32
    %13 = vector.broadcast %cst_11 : f32 to vector<32x32xf32>
    %14 = arith.maximumf %12, %13 : vector<32x32xf32>
    %c0_12 = arith.constant 0 : index
    %c0_13 = arith.constant 0 : index
    %15 = vector.load %arg3[%c0_12, %c0_13] : memref<4x32xf32, #tpu.memory_space<vmem>>, vector<4x32xf32>
    %cst_14 = arith.constant dense<0.000000e+00> : vector<4x32xf32>
    %16 = tpu.matmul %15, %14, %cst_14 {dimension_numbers = #tpu.dot_dimension_numbers<[1], [0], [0], [1], [0, 0, 1, 1], [], []>} : vector<4x32xf32>, vector<32x32xf32>, vector<4x32xf32> -> vector<4x32xf32>
    %c0_15 = arith.constant 0 : index
    %c0_16 = arith.constant 0 : index
    %17 = vector.load %arg8[%c0_15, %c0_16] : memref<32x32xf32, #tpu.memory_space<vmem>>, vector<32x32xf32>
    %cst_17 = arith.constant dense<0.000000e+00> : vector<4x32xf32>
    %18 = tpu.matmul %16, %17, %cst_17 {dimension_numbers = #tpu.dot_dimension_numbers<[1], [0], [0], [1], [0, 0, 1, 1], [], []>} : vector<4x32xf32>, vector<32x32xf32>, vector<4x32xf32> -> vector<4x32xf32>
    %c0_18 = arith.constant 0 : index
    %c0_19 = arith.constant 0 : index
    %19 = vector.load %arg9[%c0_18, %c0_19] : memref<1x32xf32, #tpu.memory_space<vmem>>, vector<1x32xf32>
    %20 = vector.broadcast %19 : vector<1x32xf32> to vector<4x32xf32>
    %21 = arith.addf %18, %20 : vector<4x32xf32>
    %cst_20 = arith.constant 0.000000e+00 : f32
    %22 = vector.broadcast %cst_20 : f32 to vector<4x32xf32>
    %23 = arith.maximumf %21, %22 : vector<4x32xf32>
    %c0_21 = arith.constant 0 : index
    %c0_22 = arith.constant 0 : index
    %24 = vector.load %arg10[%c0_21, %c0_22] : memref<32x32xf32, #tpu.memory_space<vmem>>, vector<32x32xf32>
    %cst_23 = arith.constant dense<0.000000e+00> : vector<4x32xf32>
    %25 = tpu.matmul %23, %24, %cst_23 {dimension_numbers = #tpu.dot_dimension_numbers<[1], [0], [0], [1], [0, 0, 1, 1], [], []>} : vector<4x32xf32>, vector<32x32xf32>, vector<4x32xf32> -> vector<4x32xf32>
    %c0_24 = arith.constant 0 : index
    %c0_25 = arith.constant 0 : index
    %26 = vector.load %arg11[%c0_24, %c0_25] : memref<1x32xf32, #tpu.memory_space<vmem>>, vector<1x32xf32>
    %27 = vector.broadcast %26 : vector<1x32xf32> to vector<4x32xf32>
    %28 = arith.addf %25, %27 : vector<4x32xf32>
    %cst_26 = arith.constant 0.000000e+00 : f32
    %29 = vector.broadcast %cst_26 : f32 to vector<4x32xf32>
    %30 = arith.maximumf %28, %29 : vector<4x32xf32>
    %c0_27 = arith.constant 0 : index
    %c0_28 = arith.constant 0 : index
    %31 = vector.load %arg2[%c0_27, %c0_28] : memref<4x32xf32, #tpu.memory_space<vmem>>, vector<4x32xf32>
    %32 = tpu.concatenate %31, %30 in 1 : vector<4x32xf32>, vector<4x32xf32> -> vector<4x64xf32>
    %c0_29 = arith.constant 0 : index
    %c0_30 = arith.constant 0 : index
    %33 = vector.load %arg12[%c0_29, %c0_30] : memref<64x16xf32, #tpu.memory_space<vmem>>, vector<64x16xf32>
    %cst_31 = arith.constant dense<0.000000e+00> : vector<4x16xf32>
    %34 = tpu.matmul %32, %33, %cst_31 {dimension_numbers = #tpu.dot_dimension_numbers<[1], [0], [0], [1], [0, 0, 1, 1], [], []>} : vector<4x64xf32>, vector<64x16xf32>, vector<4x16xf32> -> vector<4x16xf32>
    %c0_32 = arith.constant 0 : index
    %c0_33 = arith.constant 0 : index
    %35 = vector.load %arg13[%c0_32, %c0_33] : memref<1x16xf32, #tpu.memory_space<vmem>>, vector<1x16xf32>
    %36 = vector.broadcast %35 : vector<1x16xf32> to vector<4x16xf32>
    %37 = arith.addf %34, %36 : vector<4x16xf32>
    %c0_34 = arith.constant 0 : index
    %c0_35 = arith.constant 0 : index
    %38 = vector.load %arg14[%c0_34, %c0_35] : memref<4x16xf32, #tpu.memory_space<vmem>>, vector<4x16xf32>
    tpu.vector_store %arg14[%c0_34, %c0_35], %37 {strides = array<i32>} : memref<4x16xf32, #tpu.memory_space<vmem>>, vector<4x16xf32>,
    return
  }
  func.func @transform_0(%arg0: i32) -> (i32, i32) {
    %c0_i32 = arith.constant 0 : i32
    %c0_i32_0 = arith.constant 0 : i32
    return %arg0, %c0_i32 : i32, i32
  }
  func.func @transform_1(%arg0: i32) -> (i32, i32) {
    %c0_i32 = arith.constant 0 : i32
    %c0_i32_0 = arith.constant 0 : i32
    return %arg0, %c0_i32 : i32, i32
  }
  func.func @transform_2(%arg0: i32) -> (i32, i32) {
    %c0_i32 = arith.constant 0 : i32
    %c0_i32_0 = arith.constant 0 : i32
    %c0_i32_1 = arith.constant 0 : i32
    return %c0_i32, %c0_i32_0 : i32, i32
  }
  func.func @transform_3(%arg0: i32) -> (i32, i32) {
    %c0_i32 = arith.constant 0 : i32
    %c0_i32_0 = arith.constant 0 : i32
    %c0_i32_1 = arith.constant 0 : i32
    return %c0_i32, %c0_i32_0 : i32, i32
  }
  func.func @transform_4(%arg0: i32) -> (i32, i32) {
    %c0_i32 = arith.constant 0 : i32
    %c0_i32_0 = arith.constant 0 : i32
    %c0_i32_1 = arith.constant 0 : i32
    return %c0_i32, %c0_i32_0 : i32, i32
  }
  func.func @transform_5(%arg0: i32) -> (i32, i32) {
    %c0_i32 = arith.constant 0 : i32
    %c0_i32_0 = arith.constant 0 : i32
    %c0_i32_1 = arith.constant 0 : i32
    return %c0_i32, %c0_i32_0 : i32, i32
  }
  func.func @transform_6(%arg0: i32) -> (i32, i32) {
    %c0_i32 = arith.constant 0 : i32
    %c0_i32_0 = arith.constant 0 : i32
    %c0_i32_1 = arith.constant 0 : i32
    return %c0_i32, %c0_i32_0 : i32, i32
  }
  func.func @transform_7(%arg0: i32) -> (i32, i32) {
    %c0_i32 = arith.constant 0 : i32
    %c0_i32_0 = arith.constant 0 : i32
    %c0_i32_1 = arith.constant 0 : i32
    return %c0_i32, %c0_i32_0 : i32, i32
  }
  func.func @transform_8(%arg0: i32) -> (i32, i32) {
    %c0_i32 = arith.constant 0 : i32
    %c0_i32_0 = arith.constant 0 : i32
    %c0_i32_1 = arith.constant 0 : i32
    return %c0_i32, %c0_i32_0 : i32, i32
  }
  func.func @transform_9(%arg0: i32) -> (i32, i32) {
    %c0_i32 = arith.constant 0 : i32
    %c0_i32_0 = arith.constant 0 : i32
    %c0_i32_1 = arith.constant 0 : i32
    return %c0_i32, %c0_i32_0 : i32, i32
  }
  func.func @transform_10(%arg0: i32) -> (i32, i32) {
    %c0_i32 = arith.constant 0 : i32
    %c0_i32_0 = arith.constant 0 : i32
    %c0_i32_1 = arith.constant 0 : i32
    return %c0_i32, %c0_i32_0 : i32, i32
  }
  func.func @transform_11(%arg0: i32) -> (i32, i32) {
    %c0_i32 = arith.constant 0 : i32
    %c0_i32_0 = arith.constant 0 : i32
    %c0_i32_1 = arith.constant 0 : i32
    return %c0_i32, %c0_i32_0 : i32, i32
  }
  func.func @transform_12(%arg0: i32) -> (i32, i32) {
    %c0_i32 = arith.constant 0 : i32
    %c0_i32_0 = arith.constant 0 : i32
    %c0_i32_1 = arith.constant 0 : i32
    return %c0_i32, %c0_i32_0 : i32, i32
  }
  func.func @transform_13(%arg0: i32) -> (i32, i32) {
    %c0_i32 = arith.constant 0 : i32
    %c0_i32_0 = arith.constant 0 : i32
    return %arg0, %c0_i32 : i32, i32
  }
}

</mosaic_0001>

<bundles_post_ra>
// kernel: tpu_custom_call.1
= control target key start
LH: loop header
LB: loop body
LE: loop exit
PB: predicated region body
PF: predicated region fallthrough
CT: control target
= control target key end

     0   :  { %18 = vsyncpa [#allocation3], 0  ;;  %s1251_s0 = inlined_call_operand.vmem [shape: f32[32,32], index: 0, kind: input, shape index: {}]   ;;  %s1252_s1 = inlined_call_operand.hbm [shape: f32[4,32], index: 1, kind: input, shape index: {}]   ;;  %s1253_s2 = inlined_call_operand.hbm [shape: f32[4,32], index: 2, kind: input, shape index: {}]   ;;  %s1254_s3 = inlined_call_operand.vmem [shape: f32[32,32], index: 3, kind: input, shape index: {}]   ;;  %s1255_s4 = inlined_call_operand.hbm [shape: f32[1,32], index: 4, kind: input, shape index: {}]   ;;  %s1256_s5 = inlined_call_operand.hbm [shape: f32[32,32], index: 5, kind: input, shape index: {}]   ;;  %s1257_s6 = inlined_call_operand.hbm [shape: f32[1,32], index: 6, kind: input, shape index: {}]   ;;  %s1258_s7 = inlined_call_operand.hbm [shape: f32[32,32], index: 7, kind: input, shape index: {}]   ;;  %s1259_s8 = inlined_call_operand.hbm [shape: f32[1,32], index: 8, kind: input, shape index: {}]   ;;  %s1260_s9 = inlined_call_operand.vmem [shape: f32[32,32], index: 9, kind: input, shape index: {}]   ;;  %s1261_s10 = inlined_call_operand.vmem [shape: f32[1,32], index: 10, kind: input, shape index: {}]   ;;  %s1262_s11 = inlined_call_operand.vmem [shape: f32[64,16], index: 11, kind: input, shape index: {}]   ;;  %s1263_s12 = inlined_call_operand.vmem [shape: f32[1,16], index: 12, kind: input, shape index: {}]   ;;  %s1264_s13 = inlined_call_operand.hbm [shape: f32[4,16], index: 13, kind: output, shape index: {}]  }
   0x1   :  { %19 = vsyncpa [#allocation6], 0 }
   0x2   :  { %20 = vsyncpa [#allocation9], 0 }
   0x3   :  { %21 = vsyncpa [#allocation12], 0 }
   0x4   :  { %22 = vsyncpa [#allocation4], 0  ;;  %s1038_s25 = smov [#allocation5]   ;;  %s1039_s27 = smov [#allocation8]  }
   0x5   :  { %s41_s26 = sshll.u32 %s1038_s25, 4  ;;  %s62_s28 = sshll.u32 %s1039_s27, 4  ;;  %s42_s26 = int_to_ptr.vmem [resolvable:$true] %s41_s26  ;;  %s63_s28 = int_to_ptr.vmem [resolvable:$true] %s62_s28 }
   0x6   :  { %s876_s29 = scalar_lea.vmem %s42_s26, 64  ;;  %p881_p1 = scmp.lt.s32.totalorder %s42_s26, %s42_s26 }
   0x7   :  { %p877_p0 = scmp.ne.s32.totalorder %s42_s26, %s876_s29  ;;  %p882_p2 = scmp.lt.s32.totalorder %s876_s29, %s876_s29 }
   0x9   :  { %p883_p3 = por %p882_p2, %p881_p1 }
   0xb   :  { %p884_p4 = pnand %p883_p3, %p877_p0 }
   0xd   :  { %887 = shalt.err (!%p884_p4)
}
   0xe   :  { %44 = dma.hbm_to_vmem [thread:$0]  %s1253_s2, 64, %s42_s26, [#allocation6]  }
   0xf   :  { %s896_s15 = scalar_lea.vmem %s63_s28, 512  ;;  %p901_p6 = scmp.lt.s32.totalorder %s63_s28, %s63_s28 }
  0x10   :  { %p897_p5 = scmp.ne.s32.totalorder %s63_s28, %s896_s15  ;;  %p902_p7 = scmp.lt.s32.totalorder %s896_s15, %s896_s15 }
  0x12   :  { %p903_p8 = por %p902_p7, %p901_p6 }
  0x14   :  { %p904_p9 = pnand %p903_p8, %p897_p5 }
  0x16   :  { %907 = shalt.err (!%p904_p9)
}
  0x17   :  { %s1040_s16 = smov 128   ;;  %s1041_s17 = smov 8  }
  0x18   :  { %68 = dma.hbm_to_vmem [thread:$0]  %s1256_s5, 512, %s63_s28, [#allocation9], %s1040_s16, %s1040_s16, %s1041_s17  }
  0x19   :  { %s1042_s20 = smov [#allocation11]   ;;  %s1043_s22 = smov [#allocation2]  }
  0x1a   :  { %s84_s21 = sshll.u32 %s1042_s20, 4  ;;  %s31_s23 = sshll.u32 %s1043_s22, 4  ;;  %s85_s21 = int_to_ptr.vmem [resolvable:$true] %s84_s21  ;;  %s32_s23 = int_to_ptr.vmem [resolvable:$true] %s31_s23 }
  0x1b   :  { %s916_s2 = scalar_lea.vmem %s85_s21, 512  ;;  %p921_p11 = scmp.lt.s32.totalorder %s85_s21, %s85_s21 }
  0x1c   :  { %p917_p10 = scmp.ne.s32.totalorder %s85_s21, %s916_s2  ;;  %p922_p12 = scmp.lt.s32.totalorder %s916_s2, %s916_s2 }
  0x1e   :  { %p923_p13 = por %p922_p12, %p921_p11 }
  0x20   :  { %p924_p0 = pnand %p923_p13, %p917_p10 }
  0x22   :  { %927 = shalt.err (!%p924_p0)
}
  0x23   :  { %90 = dma.hbm_to_vmem [thread:$0]  %s1258_s7, 512, %s85_s21, [#allocation12], %s1040_s16, %s1040_s16, %s1041_s17  }
  0x24   :  { %s936_s26 = scalar_lea.vmem %s32_s23, 64  ;;  %p941_p2 = scmp.lt.s32.totalorder %s32_s23, %s32_s23 }
  0x25   :  { %p937_p1 = scmp.ne.s32.totalorder %s32_s23, %s936_s26  ;;  %p942_p3 = scmp.lt.s32.totalorder %s936_s26, %s936_s26 }
  0x27   :  { %p943_p4 = por %p942_p3, %p941_p2 }
  0x29   :  { %p944_p5 = pnand %p943_p4, %p937_p1 }
  0x2b   :  { %947 = shalt.err (!%p944_p5)
}
  0x2c   :  { %34 = dma.hbm_to_vmem [thread:$0]  %s1252_s1, 64, %s32_s23, [#allocation3]  }
  0x2d   :  { %s1044_s28 = smov [#allocation7]   ;;  %s1045_s30 = smov [#allocation10]  }
  0x2e   :  { %s53_s29 = sshll.u32 %s1044_s28, 4  ;;  %s75_s14 = sshll.u32 %s1045_s30, 4  ;;  %s54_s29 = int_to_ptr.vmem [resolvable:$true] %s53_s29  ;;  %s76_s14 = int_to_ptr.vmem [resolvable:$true] %s75_s14 }
  0x2f   :  { %s956_s15 = scalar_lea.vmem %s54_s29, 16  ;;  %s960_s7 = scalar_lea.vmem %s54_s29, 32 }
  0x30   :  { %p957_p6 = scmp.ne.s32.totalorder %s54_s29, %s956_s15  ;;  %p961_p7 = scmp.lt.s32.totalorder %s54_s29, %s54_s29 }
  0x31   :  { %p962_p8 = scmp.lt.s32.totalorder %s960_s7, %s956_s15 }
  0x33   :  { %p963_p9 = por %p962_p8, %p961_p7 }
  0x35   :  { %p964_p10 = pnand %p963_p9, %p957_p6 }
  0x37   :  { %967 = shalt.err (!%p964_p10)
}
  0x38   :  { %56 = dma.hbm_to_vmem [thread:$0]  %s1255_s4, 16, %s54_s29, [#allocation6]  }
  0x39   :  { %s976_s18 = scalar_lea.vmem %s76_s14, 16  ;;  %s980_s1 = scalar_lea.vmem %s76_s14, 32 }
  0x3a   :  { %p977_p11 = scmp.ne.s32.totalorder %s76_s14, %s976_s18  ;;  %p981_p12 = scmp.lt.s32.totalorder %s76_s14, %s76_s14 }
  0x3b   :  { %p982_p13 = scmp.lt.s32.totalorder %s980_s1, %s976_s18 }
  0x3d   :  { %p983_p0 = por %p982_p13, %p981_p12 }
  0x3f   :  { %p984_p1 = pnand %p983_p0, %p977_p11 }
  0x41   :  { %987 = shalt.err (!%p984_p1)
}
  0x42   :  { %78 = dma.hbm_to_vmem [thread:$0]  %s1257_s6, 16, %s76_s14, [#allocation9]  }
  0x43   :  { %s1046_s21 = smov [#allocation13]  }
  0x44   :  { %s97_s22 = sshll.u32 %s1046_s21, 4  ;;  %s98_s22 = int_to_ptr.vmem [resolvable:$true] %s97_s22 }
  0x45   :  { %s996_s23 = scalar_lea.vmem %s98_s22, 16  ;;  %s1000_s2 = scalar_lea.vmem %s98_s22, 32 }
  0x46   :  { %p997_p2 = scmp.ne.s32.totalorder %s98_s22, %s996_s23  ;;  %p1001_p3 = scmp.lt.s32.totalorder %s98_s22, %s98_s22 }
  0x47   :  { %p1002_p4 = scmp.lt.s32.totalorder %s1000_s2, %s996_s23 }
  0x49   :  { %p1003_p5 = por %p1002_p4, %p1001_p3 }
  0x4b   :  { %p1004_p6 = pnand %p1003_p5, %p997_p2 }
  0x4d   :  { %1007 = shalt.err (!%p1004_p6)
}
  0x4e   :  { %100 = dma.hbm_to_vmem [thread:$0]  %s1259_s8, 16, %s98_s22, [#allocation12]  }
  0x4f   :  { %1028 = dma.done.wait [#allocation3], 64  }
  0x50   :  { %1029 = vsyncadd [#allocation3], 4294967232 }
  0x51   :  { %1030 = dma.done.wait [#allocation6], 80  }
  0x52   :  { %1031 = vsyncadd [#allocation6], 4294967216 }
  0x53   :  { %1032 = dma.done.wait [#allocation9], 528  }
  0x54   :  { %1033 = vsyncadd [#allocation9], 4294966768 }
  0x55   :  { %1034 = dma.done.wait [#allocation12], 528  }
  0x56   :  { %1035 = vsyncadd [#allocation12], 4294966768  ;;  %vm145_vm0 = vcmask 261120   ;;  %v137_v0 = vld [vmem:[%s1254_s3 + $0x18] sm:$0xff]  ;;  %v136_v1 = vld [vmem:[%s1254_s3 + $0x10] sm:$0xff]  ;;  %v1047_v25 = vmov 0.0  }
  0x57   :  { %775 = vmatprep.subr.mxu0 %v137_v0  ;;  %v130_v2 = vld [vmem:[%s1251_s0] sm:$0xff]  ;;  %v135_v3 = vld [vmem:[%s1254_s3 + $0x8] sm:$0xff]  ;;  %v132_v6 = vld [vmem:[%s1251_s0 + $0x10] sm:$0xff]  ;;  %vm1048_vm1 = vmmov 0   ;;  %s1049_s1 = smov 32   ;;  %vm624_vm2 = vcmask 523264  }
  0x58   :  { %776 = vmatpush3.msra.mxu0 %v137_v0  ;;  %783 = vmatprep.mubr.msk.f32.mxu0 %vm145_vm0, %v130_v2  ;;  %v134_v4 = vld [vmem:[%s1254_s3] sm:$0xff]  ;;  %v131_v5 = vld [vmem:[%s1251_s0 + $0x8] sm:$0xff]  ;;  %v133_v7 = vld [vmem:[%s1251_s0 + $0x18] sm:$0xff]  ;;  %vm698_vm3 = vcmask 125952  }
  0x59   :  { %777 = vmatprep.subr.mxu0 %v136_v1  ;;  %v250_v8 = vld [vmem:[#allocation8 + $0x18] sm:$0xff]  ;;  %v249_v9 = vld [vmem:[#allocation8 + $0x10] sm:$0xff]  ;;  %v248_v10 = vld [vmem:[#allocation8 + $0x8] sm:$0xff] }
  0x5a   :  { %778 = vmatpush3.msra.mxu0 %v136_v1  ;;  %789 = vmatprep.subr.mxu1 %v250_v8  ;;  %v247_v11 = vld [vmem:[#allocation8] sm:$0xff]  ;;  %v718_v12 = vld [vmem:[#allocation7] ss:$0 sm:$0xff]  ;;  %v435_v27 = vld [vmem:[#allocation11 + $0x10] sm:$0xff] }
  0x5b   :  { %779 = vmatprep.subr.mxu0 %v135_v3  ;;  %790 = vmatpush3.msra.mxu1 %v250_v8  ;;  %v436_v26 = vld [vmem:[#allocation11 + $0x18] sm:$0xff]  ;;  %v434_v28 = vld [vmem:[#allocation11 + $0x8] sm:$0xff]  ;;  %v433_v43 = vld [vmem:[#allocation11] sm:$0xff] }
  0x5c   :  { %780 = vmatpush3.msra.mxu0 %v135_v3  ;;  %791 = vmatprep.subr.mxu1 %v249_v9  ;;  %v723_v31 = vld [vmem:[#allocation10] ss:$0 sm:$0xff]  ;;  %v359_v42 = vld [vmem:[#allocation5] sm:$0xf]  ;;  %v521_v44 = vld [vmem:[%s1260_s9 + $0x18] sm:$0xff] }
  0x5d   :  { %781 = vmatprep.subr.mxu0 %v134_v4  ;;  %792 = vmatpush3.msra.mxu1 %v249_v9  ;;  %v520_v47 = vld [vmem:[%s1260_s9 + $0x10] sm:$0xff]  ;;  %v519_v48 = vld [vmem:[%s1260_s9 + $0x8] sm:$0xff]  ;;  %v518_v49 = vld [vmem:[%s1260_s9] sm:$0xff] }
  0x5e   :  { %782 = vmatpush3.msra.mxu0 %v134_v4  ;;  %793 = vmatprep.subr.mxu1 %v248_v10  ;;  %v729_v50 = vld [vmem:[#allocation13] ss:$0 sm:$0xff]  ;;  %v616_v55 = vld [vmem:[%s1262_s11 + $0x38] sm:$0xff]  ;;  %v615_v56 = vld [vmem:[%s1262_s11 + $0x30] sm:$0xff] }
  0x5f   :  { %784 = vmatmul.mubr.msk.f32.vlgmr.msra.gmra.mxu0 %vm145_vm0, %v131_v5  ;;  %794 = vmatpush3.msra.mxu1 %v248_v10  ;;  %v614_v57 = vld [vmem:[%s1262_s11 + $0x28] sm:$0xff]  ;;  %v613_v58 = vld [vmem:[%s1262_s11 + $0x20] sm:$0xff]  ;;  %v612_v59 = vld [vmem:[%s1262_s11 + $0x18] sm:$0xff] }
  0x60   :  { %786 = vmatprep.mubr.msk.f32.mxu0 %vm145_vm0, %v132_v6  ;;  %795 = vmatprep.subr.mxu1 %v247_v11  ;;  %v611_v60 = vld [vmem:[%s1262_s11 + $0x10] sm:$0xff]  ;;  %v610_v61 = vld [vmem:[%s1262_s11 + $0x8] sm:$0xff]  ;;  %v609_v62 = vld [vmem:[%s1262_s11] sm:$0xff]  ;;  %s1050_s11 = smov [#allocation14]  }
  0x61   :  { %796 = vmatpush3.msra.mxu1 %v247_v11  ;;  %803 = vmatprep.subr.mxu0 %v1047_v25  ;;  %v731_v63 = vld [vmem:[%s1261_s10] ss:$0 sm:$0xff]  ;;  %s706_s19 = sshll.u32 %s1050_s11, 4  ;;  %s707_s19 = int_to_ptr.vmem [resolvable:$true] %s706_s19 }
  0x62   :  { %814 = vmatprep.subr.mxu1 %v1047_v25  ;;  %v603_v4 = vld [vmem:[#allocation2] sm:$0xf]  ;;  %s1008_s10 = scalar_lea.vmem %s707_s19, 64  ;;  %p1013_p8 = scmp.lt.s32.totalorder %s707_s19, %s707_s19 }
  0x63   :  { %787 = vmatmul.mubr.msk.f32.gmra.mxu0 %vm145_vm0, %v133_v7  ;;  %v733_v7 = vld [vmem:[%s1263_s12] ss:$0 sm:$0xff]  ;;  %p1009_p7 = scmp.ne.s32.totalorder %s707_s19, %s1008_s10  ;;  %p1014_p9 = scmp.lt.s32.totalorder %s1008_s10, %s1008_s10 }
  0x64   :  { %811 = vmatprep.mubr.msk.f32.mxu0 %vm1048_vm1, %v1047_v25 }
  0x65   :  { %p1015_p10 = por %p1014_p9, %p1013_p8 }
  0x67   :  { %p1016_p11 = pnand %p1015_p10, %p1009_p7 }
 0x11f   :  { %v785_v13 = vpop.f32.mrf.mxu0 }
 0x120   :  { %v230_v14 = vadd.f32 %v785_v13, %v718_v12 }
 0x121   :  { %v224_v15 = vpop.f32.mrf.mxu0 }
 0x122   :  { %v225_v16 = vadd.f32 %v718_v12, %v224_v15  ;;  %v244_v19 = vmax.f32 %v230_v14, 0.0 }
 0x123   :  { %v788_v17 = vpop.f32.mrf.mxu0 }
 0x124   :  { %v243_v18 = vmax.f32 %v225_v16, 0.0  ;;  %v240_v20 = vadd.f32 %v788_v17, %v718_v12 }
 0x125   :  { %v234_v21 = vpop.f32.mrf.mxu0 }
 0x126   :  { %v235_v22 = vadd.f32 %v718_v12, %v234_v21  ;;  %797 = vmatprep.mubr.msk.f32.mxu1 %vm145_vm0, %v243_v18  ;;  %v246_v24 = vmax.f32 %v240_v20, 0.0 }
 0x127   :  { %798 = vmatmul.mubr.msk.f32.vlgmr.msra.gmra.mxu1 %vm145_vm0, %v244_v19 }
 0x128   :  { %v245_v23 = vmax.f32 %v235_v22, 0.0  ;;  %815 = vmatpush3.msra.mxu1 %v436_v26 }
 0x129   :  { %816 = vmatprep.subr.mxu1 %v1047_v25 }
 0x12a   :  { %800 = vmatprep.mubr.msk.f32.mxu1 %vm145_vm0, %v245_v23  ;;  %817 = vmatpush3.msra.mxu1 %v435_v27 }
 0x12b   :  { %801 = vmatmul.mubr.msk.f32.gmra.mxu1 %vm145_vm0, %v246_v24  ;;  %818 = vmatprep.subr.mxu1 %v1047_v25 }
 0x12c   :  { %822 = vmatprep.mubr.msk.f32.mxu1 %vm1048_vm1, %v1047_v25  ;;  %819 = vmatpush3.msra.mxu1 %v434_v28 }
 0x12d   :  { %820 = vmatprep.subr.mxu1 %v1047_v25 }
 0x12e   :  { %821 = vmatpush3.msra.mxu1 %v433_v43 }
 0x12f   :  { %836 = vmatprep.subr.mxu1 %v1047_v25 }
 0x1e7   :  { %v799_v29 = vpop.f32.mrf.mxu1 }
 0x1e8   :  { %v342_v35 = vadd.f32 %v799_v29, %v723_v31 }
 0x1e9   :  { %v336_v30 = vpop.f32.mrf.mxu1 }
 0x1ea   :  { %v337_v38 = vadd.f32 %v723_v31, %v336_v30  ;;  %v356_v40 = vmax.f32 %v342_v35, 0.0 }
 0x1eb   :  { %v802_v32 = vpop.f32.mrf.mxu1 }
 0x1ec   :  { %v352_v33 = vadd.f32 %v802_v32, %v723_v31  ;;  %v355_v41 = vmax.f32 %v337_v38, 0.0 }
 0x1ed   :  { %v346_v34 = vpop.f32.mrf.mxu1 }
 0x1ee   :  { %v358_v36 = vmax.f32 %v352_v33, 0.0  ;;  %v347_v37 = vadd.f32 %v723_v31, %v346_v34 }
 0x1f0   :  { %v357_v39 = vmax.f32 %v347_v37, 0.0  ;;  %804 = vmatpush3.msra.mxu0 %v358_v36 }
 0x1f1   :  { %805 = vmatprep.subr.mxu0 %v1047_v25 }
 0x1f2   :  { %806 = vmatpush3.msra.mxu0 %v357_v39 }
 0x1f3   :  { %807 = vmatprep.subr.mxu0 %v1047_v25 }
 0x1f4   :  { %808 = vmatpush3.msra.mxu0 %v356_v40 }
 0x1f5   :  { %809 = vmatprep.subr.mxu0 %v1047_v25 }
 0x1f6   :  { %810 = vmatpush3.msra.mxu0 %v355_v41 }
 0x1f7   :  { %812 = vmatmul.mubr.msk.f32.vlgmr.msra.gmra.mxu0 %vm145_vm0, %v359_v42  ;;  %825 = vmatprep.subr.mxu0 %v1047_v25 }
 0x1f8   :  { %833 = vmatprep.mubr.msk.f32.mxu0 %vm1048_vm1, %v1047_v25  ;;  %826 = vmatpush3.msra.mxu0 %v521_v44 }
 0x1f9   :  { %827 = vmatprep.subr.mxu0 %v1047_v25 }
 0x1fa   :  { %828 = vmatpush3.msra.mxu0 %v520_v47 }
 0x1fb   :  { %829 = vmatprep.subr.mxu0 %v1047_v25 }
 0x1fc   :  { %830 = vmatpush3.msra.mxu0 %v519_v48 }
 0x1fd   :  { %831 = vmatprep.subr.mxu0 %v1047_v25 }
 0x1fe   :  { %832 = vmatpush3.msra.mxu0 %v518_v49 }
 0x2b7   :  { %v429_v45 = vpop.f32.mrf.mxu0 }
 0x2b8   :  { %823 = vmatmul.mubr.msk.f32.vlgmr.msra.gmra.mxu1 %vm145_vm0, %v429_v45 }
 0x2b9   :  { %v813_v46 = vpop.f32.mrf.mxu0  ;;  %852 = vmatprep.mubr.msk.f32.mxu1 %vm1048_vm1, %v1047_v25  ;;  %837 = vmatpush3.msra.mxu1 %v616_v55 }
 0x2ba   :  { %838 = vmatprep.subr.mxu1 %v1047_v25 }
 0x2bb   :  { %839 = vmatpush3.msra.mxu1 %v615_v56 }
 0x2bc   :  { %840 = vmatprep.subr.mxu1 %v1047_v25 }
 0x2bd   :  { %841 = vmatpush3.msra.mxu1 %v614_v57 }
 0x2be   :  { %842 = vmatprep.subr.mxu1 %v1047_v25 }
 0x2bf   :  { %843 = vmatpush3.msra.mxu1 %v613_v58 }
 0x2c0   :  { %844 = vmatprep.subr.mxu1 %v1047_v25 }
 0x2c1   :  { %845 = vmatpush3.msra.mxu1 %v612_v59 }
 0x2c2   :  { %846 = vmatprep.subr.mxu1 %v1047_v25 }
 0x2c3   :  { %847 = vmatpush3.msra.mxu1 %v611_v60 }
 0x2c4   :  { %848 = vmatprep.subr.mxu1 %v1047_v25 }
 0x2c5   :  { %849 = vmatpush3.msra.mxu1 %v610_v61 }
 0x2c6   :  { %850 = vmatprep.subr.mxu1 %v1047_v25 }
 0x2c7   :  { %851 = vmatpush3.msra.mxu1 %v609_v62 }
 0x378   :  { %v513_v51 = vpop.f32.mrf.mxu1 }
 0x379   :  { %v514_v52 = vadd.f32 %v729_v50, %v513_v51 }
 0x37a   :  { %v824_v53 = vpop.f32.mrf.mxu1 }
 0x37b   :  { %v517_v54 = vmax.f32 %v514_v52, 0.0 }
 0x37d   :  { %834 = vmatmul.mubr.msk.f32.vlgmr.msra.gmra.mxu0 %vm145_vm0, %v517_v54 }
 0x43d   :  { %v598_v0 = vpop.f32.mrf.mxu0 }
 0x43e   :  { %v599_v1 = vadd.f32 %v731_v63, %v598_v0 }
 0x43f   :  { %v835_v2 = vpop.f32.mrf.mxu0 }
 0x440   :  { %v602_v3 = vmax.f32 %v599_v1, 0.0 }
 0x442   :  { %605 = vrot.lane.b32.xlu0 %v602_v3, %s1049_s1 }
 0x4b4   :  { %v606_v5 = vpop.permute.xlu0 %605 }
 0x4b5   :  { %v608_v6 = vsel %vm145_vm0, %v603_v4, %v606_v5 }
 0x4b6   :  { %853 = vmatmul.mubr.msk.f32.vlgmr.msra.gmra.mxu1 %vm624_vm2, %v608_v6 }
 0x576   :  { %v694_v8 = vpop.f32.mrf.mxu1 }
 0x577   :  { %v695_v9 = vadd.f32 %v733_v7, %v694_v8 }
 0x578   :  { %v854_v10 = vpop.f32.mrf.mxu1 }
 0x579   :  { %699 = vst.msk [vmem:[#allocation14] sm:$0xf] %vm698_vm3, %v695_v9 }
 0x57a   :  { %1019 = shalt.err (!%p1016_p11)
}
 0x57b   :  { %709 = dma.vmem_to_hbm [thread:$0]  %s707_s19, 64, %s1264_s13, [#allocation4]  }
 0x57c   :  { %1036 = dma.done.wait [#allocation4], 64  }
 0x57d   :  { %1037 = vsyncadd [#allocation4], 4294967232 }
 0x57e   :  { %713 = vsyncpa [#allocation3], 1 }
 0x57f   :  { %714 = vsyncpa [#allocation6], 1 }
 0x580   :  { %715 = vsyncpa [#allocation9], 1 }
 0x581   :  { %716 = vsyncpa [#allocation12], 1 }
 0x582   :  { %717 = vsyncpa [#allocation4], 1 }

</bundles_post_ra>
